<compile_context>
chip_gen: v6e
topology: v6e:2x2x1
jax: 0.10.0
libtpu: 0.0.40
codegen_flags: <defaults>
</compile_context>

<pallas_src>
import math

import jax
import jax.numpy as jnp
from jax.experimental import pallas as pl
from jax.experimental.pallas import tpu as pltpu


def _bin_bounds(in_size: int, out_size: int):
    """PyTorch adaptive pooling bin boundaries (static Python ints)."""
    return [
        (math.floor(i * in_size / out_size), math.ceil((i + 1) * in_size / out_size))
        for i in range(out_size)
    ]


def _choose_batch_tile(N, H, W, C, itemsize):
    """Largest divisor of N whose block fits the VMEM budget, keeping >=2 steps."""
    # Per-sample footprint: input (double-buffered by the pipeline) + f32 working copy.
    per_sample = H * W * C * (2 * itemsize + 2 * 4)
    budget = 32 * 1024 * 1024
    cap = max(1, budget // max(per_sample, 1))
    divs = [d for d in range(1, N + 1) if N % d == 0 and d <= cap]
    if not divs:
        return 1
    multi = [d for d in divs if N // d >= 2]  # keep both v7x cores busy if possible
    return max(multi) if multi else max(divs)


def _make_kernel(sizes, H, W, in_dtype):
    sizes = tuple(sizes)
    uniq_desc = sorted(set(sizes), reverse=True)
    all_div = all(H % s == 0 and W % s == 0 for s in sizes)
    in_dtype = jnp.dtype(in_dtype)
    compute_dtype = (
        jnp.float32
        if (jnp.issubdtype(in_dtype, jnp.floating) and in_dtype.itemsize < 4)
        else in_dtype
    )
    bins = {s: (_bin_bounds(H, s), _bin_bounds(W, s)) for s in uniq_desc}

    def _tree_max(xs):
        # Pairwise elementwise-max tree over a Python list of equal-shaped arrays.
        while len(xs) > 1:
            nxt = [jnp.maximum(xs[i], xs[i + 1]) for i in range(0, len(xs) - 1, 2)]
            if len(xs) % 2:
                nxt.append(xs[-1])
            xs = nxt
        return xs[0]

    def _pool_uniform_cols(xf, s):
        # xf: (B, H, W, C) with H % s == 0, W % s == 0.
        # Returns list over column-bin j of (B, s, C)  (axis 1 = row-bin i).
        B = xf.shape[0]
        bh, bw = H // s, W // s
        # Split H (a leading dim) only — layout-free reshape; then bulk VPU max
        # over the within-bin axis handles all s row-bins at once.
        xr = xf.reshape(B, s, bh, W, C_STATIC[0])
        hred = _tree_max([xr[:, :, u] for u in range(bh)])  # (B, s, W, C)
        # Per column bin: contiguous sublane slice + second-minor reduce.
        return [
            jnp.max(hred[:, :, j * bw:(j + 1) * bw, :], axis=2)  # (B, s, C)
            for j in range(s)
        ]

    def _pool_adaptive_cols(xf, s):
        # General (ragged-bin) fallback, channels-last so slices never cut lanes.
        hb, wb = bins[s]
        cols = []
        for (w0, w1) in wb:
            rows = []
            for (h0, h1) in hb:
                win = xf[:, h0:h1, w0:w1, :]                        # (B, dh, dw, C)
                rows.append(jnp.max(jnp.max(win, axis=2), axis=1))  # (B, C)
            cols.append(jnp.stack(rows, axis=1))                    # (B, s, C)
        return cols

    def _coarsen_cols(cols_f, s_f, s_c):
        # Derive an (s_c x s_c) level from the finer (s_f x s_f) level (bins nest).
        r = s_f // s_c
        out = []
        for J in range(s_c):
            m = _tree_max([cols_f[J * r + k] for k in range(r)])      # (B, s_f, C)
            rows = [
                jnp.max(m[:, I * r:(I + 1) * r, :], axis=1)           # (B, C)
                for I in range(s_c)
            ]
            out.append(jnp.stack(rows, axis=1))                       # (B, s_c, C)
        return out

    # C is only known inside the kernel (from the block shape); stash it here so
    # _pool_uniform_cols can reshape without re-reading it each call.
    C_STATIC = [None]

    def kernel(x_ref, o_ref):
        xf = x_ref[...].astype(compute_dtype)   # (B, H, W, C) — C on lanes
        C_STATIC[0] = xf.shape[-1]

        cols_by_s = {}
        prev_s = None
        for s in uniq_desc:
            if all_div and prev_s is not None and prev_s % s == 0:
                cols_by_s[s] = _coarsen_cols(cols_by_s[prev_s], prev_s, s)
            elif H % s == 0 and W % s == 0:
                cols_by_s[s] = _pool_uniform_cols(xf, s)
            else:
                cols_by_s[s] = _pool_adaptive_cols(xf, s)
            prev_s = s

        # One lane-dense store of the whole (B, sum(s*s), C) slab.
        parts = []
        for s in sizes:
            parts.extend(cols_by_s[s])          # level rows ordered (j*s + i)
        out_val = parts[0] if len(parts) == 1 else jnp.concatenate(parts, axis=1)
        o_ref[...] = out_val.astype(o_ref.dtype)

    return kernel


def pyramid_maxpool_2d(x: jax.Array, levels) -> jax.Array:
    """x: (N, C, H, W) -> (N, C * sum_l (2**(l-1))**2), matching PyTorch."""
    levels = tuple(levels)
    N, C, H, W = x.shape
    sizes = [2 ** (lvl - 1) for lvl in levels]
    s_total = sum(s * s for s in sizes)

    # Channels-last for the kernel (C -> lane axis). Callers that already hold
    # NHWC data could pass it directly and skip this transpose.
    x_nhwc = jnp.transpose(x, (0, 2, 3, 1))     # (N, H, W, C)

    b_tile = _choose_batch_tile(N, H, W, C, jnp.dtype(x.dtype).itemsize)
    grid = (N // b_tile,)

    kernel = _make_kernel(sizes, H, W, x.dtype)

    out = pl.pallas_call(
        kernel,
        out_shape=jax.ShapeDtypeStruct((N, s_total, C), x.dtype),
        grid_spec=pltpu.PrefetchScalarGridSpec(
            num_scalar_prefetch=0,
            grid=grid,
            in_specs=[pl.BlockSpec((b_tile, H, W, C), lambda b: (b, 0, 0, 0))],
            out_specs=pl.BlockSpec((b_tile, s_total, C), lambda b: (b, 0, 0)),
        ),
        compiler_params=pltpu.CompilerParams(
            dimension_semantics=("parallel",),
            vmem_limit_bytes=48 * 1024 * 1024,
        ),
    )(x_nhwc)                                   # (N, s_total, C), rows = j*s + i

    # Tiny wrapper glue: reorder each level to PyTorch's c-major flattening
    # (output is ~sum(s*s)*C per sample — negligible vs. the H*W*C input read).
    pieces = []
    off = 0
    for s in sizes:
        chunk = out[:, off:off + s * s, :]               # (N, s*s, C), rows j*s+i
        chunk = chunk.reshape(N, s, s, C)                # (n, j, i, c)
        pieces.append(jnp.transpose(chunk, (0, 3, 2, 1)).reshape(N, C * s * s))
        off += s * s
    return jnp.concatenate(pieces, axis=1)


def _reference(x, levels):
    """Pure-JAX reference with identical adaptive-pool semantics."""
    N, C, H, W = x.shape
    pieces = []
    for lvl in levels:
        s = 2 ** (lvl - 1)
        hb = _bin_bounds(H, s)
        wb = _bin_bounds(W, s)
        y = jnp.stack(
            [
                jnp.stack(
                    [jnp.max(x[:, :, h0:h1, w0:w1], axis=(2, 3)) for (w0, w1) in wb],
                    axis=-1,
                )
                for (h0, h1) in hb
            ],
            axis=2,
        )  # (N, C, s, s)
        pieces.append(y.reshape(N, C * s * s))
    return jnp.concatenate(pieces, axis=1)


if __name__ == "__main__":
    levels = (1, 2, 3)  # output sizes 1x1, 2x2, 4x4
    key = jax.random.PRNGKey(0)
    x = jax.random.normal(key, (2, 4, 16, 16), dtype=jnp.float32)

    out = pyramid_maxpool_2d(x, levels)
    out = jax.block_until_ready(out)

    ref = _reference(x, levels)
    assert out.shape == (2, 4 * (1 + 4 + 16)), out.shape
    assert jnp.allclose(out, ref), "mismatch vs reference"

    print("KERNEL_OK")
</pallas_src>

<mosaic_0001>
module attributes {stable_mosaic.version = 11 : i64} {
  func.func @kernel(%arg0: i32, %arg1: memref<1x16x16x4xf32, #tpu.memory_space<vmem>>, %arg2: memref<1x21x4xf32, #tpu.memory_space<vmem>>) attributes {dimension_semantics = [#tpu.dimension_semantics<parallel>], iteration_bounds = array<i64: 2>, scalar_prefetch = 0 : i64, scratch_operands = 0 : i64, tpu.core_type = #tpu.core_type<tc>, window_params = [{transform_indices = @transform_0, window_bounds = array<i64: 1, 16, 16, 4>}, {transform_indices = @transform_1, window_bounds = array<i64: 1, 21, 4>}]} {
    %c0 = arith.constant 0 : index
    %c0_0 = arith.constant 0 : index
    %c0_1 = arith.constant 0 : index
    %c0_2 = arith.constant 0 : index
    %0 = vector.load %arg1[%c0, %c0_0, %c0_1, %c0_2] : memref<1x16x16x4xf32, #tpu.memory_space<vmem>>, vector<1x16x16x4xf32>
    %1 = vector.shape_cast %0 : vector<1x16x16x4xf32> to vector<1x4x4x16x4xf32>
    %2 = vector.extract_strided_slice %1 {offsets = [0, 0, 0, 0, 0], sizes = [1, 4, 1, 16, 4], strides = [1, 1, 1, 1, 1]} : vector<1x4x4x16x4xf32> to vector<1x4x1x16x4xf32>
    %3 = vector.shape_cast %2 : vector<1x4x1x16x4xf32> to vector<1x4x16x4xf32>
    %4 = vector.extract_strided_slice %1 {offsets = [0, 0, 1, 0, 0], sizes = [1, 4, 1, 16, 4], strides = [1, 1, 1, 1, 1]} : vector<1x4x4x16x4xf32> to vector<1x4x1x16x4xf32>
    %5 = vector.shape_cast %4 : vector<1x4x1x16x4xf32> to vector<1x4x16x4xf32>
    %6 = vector.extract_strided_slice %1 {offsets = [0, 0, 2, 0, 0], sizes = [1, 4, 1, 16, 4], strides = [1, 1, 1, 1, 1]} : vector<1x4x4x16x4xf32> to vector<1x4x1x16x4xf32>
    %7 = vector.shape_cast %6 : vector<1x4x1x16x4xf32> to vector<1x4x16x4xf32>
    %8 = vector.extract_strided_slice %1 {offsets = [0, 0, 3, 0, 0], sizes = [1, 4, 1, 16, 4], strides = [1, 1, 1, 1, 1]} : vector<1x4x4x16x4xf32> to vector<1x4x1x16x4xf32>
    %9 = vector.shape_cast %8 : vector<1x4x1x16x4xf32> to vector<1x4x16x4xf32>
    %10 = arith.maximumf %3, %5 : vector<1x4x16x4xf32>
    %11 = arith.maximumf %7, %9 : vector<1x4x16x4xf32>
    %12 = arith.maximumf %10, %11 : vector<1x4x16x4xf32>
    %13 = vector.extract_strided_slice %12 {offsets = [0, 0, 0, 0], sizes = [1, 4, 4, 4], strides = [1, 1, 1, 1]} : vector<1x4x16x4xf32> to vector<1x4x4x4xf32>
    %cst = arith.constant dense<0xFF800000> : vector<1x4x4xf32>
    %14 = vector.multi_reduction <maximumf>, %13, %cst [2] : vector<1x4x4x4xf32> to vector<1x4x4xf32>
    %15 = vector.extract_strided_slice %12 {offsets = [0, 0, 4, 0], sizes = [1, 4, 4, 4], strides = [1, 1, 1, 1]} : vector<1x4x16x4xf32> to vector<1x4x4x4xf32>
    %cst_3 = arith.constant dense<0xFF800000> : vector<1x4x4xf32>
    %16 = vector.multi_reduction <maximumf>, %15, %cst_3 [2] : vector<1x4x4x4xf32> to vector<1x4x4xf32>
    %17 = vector.extract_strided_slice %12 {offsets = [0, 0, 8, 0], sizes = [1, 4, 4, 4], strides = [1, 1, 1, 1]} : vector<1x4x16x4xf32> to vector<1x4x4x4xf32>
    %cst_4 = arith.constant dense<0xFF800000> : vector<1x4x4xf32>
    %18 = vector.multi_reduction <maximumf>, %17, %cst_4 [2] : vector<1x4x4x4xf32> to vector<1x4x4xf32>
    %19 = vector.extract_strided_slice %12 {offsets = [0, 0, 12, 0], sizes = [1, 4, 4, 4], strides = [1, 1, 1, 1]} : vector<1x4x16x4xf32> to vector<1x4x4x4xf32>
    %cst_5 = arith.constant dense<0xFF800000> : vector<1x4x4xf32>
    %20 = vector.multi_reduction <maximumf>, %19, %cst_5 [2] : vector<1x4x4x4xf32> to vector<1x4x4xf32>
    %21 = arith.maximumf %14, %16 : vector<1x4x4xf32>
    %22 = vector.extract_strided_slice %21 {offsets = [0, 0, 0], sizes = [1, 2, 4], strides = [1, 1, 1]} : vector<1x4x4xf32> to vector<1x2x4xf32>
    %cst_6 = arith.constant dense<0xFF800000> : vector<1x4xf32>
    %23 = vector.multi_reduction <maximumf>, %22, %cst_6 [1] : vector<1x2x4xf32> to vector<1x4xf32>
    %24 = vector.extract_strided_slice %21 {offsets = [0, 2, 0], sizes = [1, 2, 4], strides = [1, 1, 1]} : vector<1x4x4xf32> to vector<1x2x4xf32>
    %cst_7 = arith.constant dense<0xFF800000> : vector<1x4xf32>
    %25 = vector.multi_reduction <maximumf>, %24, %cst_7 [1] : vector<1x2x4xf32> to vector<1x4xf32>
    %26 = vector.shape_cast %23 : vector<1x4xf32> to vector<1x1x4xf32>
    %27 = vector.shape_cast %25 : vector<1x4xf32> to vector<1x1x4xf32>
    %28 = tpu.concatenate %26, %27 in 1 : vector<1x1x4xf32>, vector<1x1x4xf32> -> vector<1x2x4xf32>
    %29 = arith.maximumf %18, %20 : vector<1x4x4xf32>
    %30 = vector.extract_strided_slice %29 {offsets = [0, 0, 0], sizes = [1, 2, 4], strides = [1, 1, 1]} : vector<1x4x4xf32> to vector<1x2x4xf32>
    %cst_8 = arith.constant dense<0xFF800000> : vector<1x4xf32>
    %31 = vector.multi_reduction <maximumf>, %30, %cst_8 [1] : vector<1x2x4xf32> to vector<1x4xf32>
    %32 = vector.extract_strided_slice %29 {offsets = [0, 2, 0], sizes = [1, 2, 4], strides = [1, 1, 1]} : vector<1x4x4xf32> to vector<1x2x4xf32>
    %cst_9 = arith.constant dense<0xFF800000> : vector<1x4xf32>
    %33 = vector.multi_reduction <maximumf>, %32, %cst_9 [1] : vector<1x2x4xf32> to vector<1x4xf32>
    %34 = vector.shape_cast %31 : vector<1x4xf32> to vector<1x1x4xf32>
    %35 = vector.shape_cast %33 : vector<1x4xf32> to vector<1x1x4xf32>
    %36 = tpu.concatenate %34, %35 in 1 : vector<1x1x4xf32>, vector<1x1x4xf32> -> vector<1x2x4xf32>
    %37 = arith.maximumf %28, %36 : vector<1x2x4xf32>
    %cst_10 = arith.constant dense<0xFF800000> : vector<1x4xf32>
    %38 = vector.multi_reduction <maximumf>, %37, %cst_10 [1] : vector<1x2x4xf32> to vector<1x4xf32>
    %39 = vector.shape_cast %38 : vector<1x4xf32> to vector<1x1x4xf32>
    %40 = tpu.concatenate %39, %28, %36, %14, %16, %18, %20 in 1 : vector<1x1x4xf32>, vector<1x2x4xf32>, vector<1x2x4xf32>, vector<1x4x4xf32>, vector<1x4x4xf32>, vector<1x4x4xf32>, vector<1x4x4xf32> -> vector<1x21x4xf32>
    %c0_11 = arith.constant 0 : index
    %c0_12 = arith.constant 0 : index
    %c0_13 = arith.constant 0 : index
    %41 = vector.load %arg2[%c0_11, %c0_12, %c0_13] : memref<1x21x4xf32, #tpu.memory_space<vmem>>, vector<1x21x4xf32>
    tpu.vector_store %arg2[%c0_11, %c0_12, %c0_13], %40 {strides = array<i32>} : memref<1x21x4xf32, #tpu.memory_space<vmem>>, vector<1x21x4xf32>,
    return
  }
  func.func @transform_0(%arg0: i32) -> (i32, i32, i32, i32) {
    %c0_i32 = arith.constant 0 : i32
    %c0_i32_0 = arith.constant 0 : i32
    %c0_i32_1 = arith.constant 0 : i32
    %c0_i32_2 = arith.constant 0 : i32
    return %arg0, %c0_i32, %c0_i32_0, %c0_i32_1 : i32, i32, i32, i32
  }
  func.func @transform_1(%arg0: i32) -> (i32, i32, i32) {
    %c0_i32 = arith.constant 0 : i32
    %c0_i32_0 = arith.constant 0 : i32
    %c0_i32_1 = arith.constant 0 : i32
    return %arg0, %c0_i32, %c0_i32_0 : i32, i32, i32
  }
}

</mosaic_0001>

<bundles_post_ra>
// kernel: tpu_custom_call.1
= control target key start
LH: loop header
LB: loop body
LE: loop exit
PB: predicated region body
PF: predicated region fallthrough
CT: control target
= control target key end

     0   :  { %s468_s6 = smov 0   ;;  %s611_s0 = inlined_call_operand.vmem [shape: f32[2,16,16,4], index: 0, kind: input, shape index: {}]   ;;  %s612_s1 = inlined_call_operand.vmem [shape: f32[2,21,4], index: 1, kind: output, shape index: {}]  }
   0x1 LB: > { %s430_s7 = sadd.s32 4294967295, %s456_s6   ;;  %p434_p0 = scmp.ge.s32.totalorder %s456_s6, 1  ;;  %s456_s6 = sphi %s468_s6, %s11_s6  }
   0x2   : > { %p87_p1 = scmp.lt.s32.totalorder %s456_s6, 3 }
   0x4   : > { %p88_p2 = pnand %p434_p0, %p87_p1 }
   0x5   : > { %p107_p3 = scmp.lt.s32.totalorder (!%p88_p2), %s430_s7, 1 }
   0x6   : > { %91 = sbr.rel (%p88_p2) target bundleno = 82 (0x52), region = 24 }
   0xb   : > { %s614_s7 = smov (!%p107_p3, %s430_s7), 1  ;;  %vm173_vm0 = vcmask 27648   ;;  %vm202_vm1 = vcmask 31748   ;;  %vm291_vm2 = vcmask 31744   ;;  %vm340_vm3 = vcmask 1042434  }
   0xc   : > { %s440_s8 = sshll.u32 %s614_s7, 8  ;;  %vm330_vm4 = vcmask 1046534   ;;  %vm342_vm5 = vcmask 1043459   ;;  %vm332_vm6 = vcmask 1047559   ;;  %vm298_vm7 = vcmask 1040384   ;;  %s441_s12 = smul.u32 24, %s614_s7 }
   0xd   : > { %s482_s11 = scalar_lea.vmem %s611_s0, %s440_s8  ;;  %vm344_vm8 = vcmask 1044484   ;;  %vm366_vm9 = vcmask 1044480   ;;  %vm373_vm10 = vcmask 28672   ;;  %vm312_vm11 = vcmask 25600  }
   0xe   : > { %v117_v0 = vld [vmem:[%s482_s11] sm:$0xff]  ;;  %v118_v1 = vld [vmem:[%s482_s11 + $0x8] sm:$0xff]  ;;  %v119_v2 = vld [vmem:[%s482_s11 + $0x10] sm:$0xff]  ;;  %s581_s15 = scalar_lea.vmem %s612_s1, %s441_s12  ;;  %vm364_vm12 = vcmask 1042432  }
   0xf   : > { %v120_v3 = vld [vmem:[%s482_s11 + $0x18] sm:$0xff]  ;;  %v121_v4 = vld [vmem:[%s482_s11 + $0x20] sm:$0xff]  ;;  %v122_v5 = vld [vmem:[%s482_s11 + $0x28] sm:$0xff]  ;;  %v149_v6 = vmax.f32 %v117_v0, %v119_v2 }
  0x10   : > { %v123_v7 = vld [vmem:[%s482_s11 + $0x30] sm:$0xff]  ;;  %v124_v8 = vld [vmem:[%s482_s11 + $0x38] sm:$0xff]  ;;  %v125_v9 = vld [vmem:[%s482_s11 + $0x40] sm:$0xff]  ;;  %v150_v17 = vmax.f32 %v118_v1, %v120_v3 }
  0x11   : > { %v126_v10 = vld [vmem:[%s482_s11 + $0x48] sm:$0xff]  ;;  %v127_v11 = vld [vmem:[%s482_s11 + $0x50] sm:$0xff]  ;;  %v128_v12 = vld [vmem:[%s482_s11 + $0x58] sm:$0xff]  ;;  %v157_v13 = vmax.f32 %v121_v4, %v123_v7  ;;  %v158_v19 = vmax.f32 %v122_v5, %v124_v8 }
  0x12   : > { %v129_v14 = vld [vmem:[%s482_s11 + $0x60] sm:$0xff]  ;;  %v130_v15 = vld [vmem:[%s482_s11 + $0x68] sm:$0xff]  ;;  %v131_v16 = vld [vmem:[%s482_s11 + $0x70] sm:$0xff]  ;;  %v151_v18 = vmax.f32 %v125_v9, %v127_v11  ;;  %v152_v28 = vmax.f32 %v126_v10, %v128_v12 }
  0x13   : > { %v132_v20 = vld [vmem:[%s482_s11 + $0x78] sm:$0xff]  ;;  %v133_v21 = vld [vmem:[%s482_s11 + $0x80] sm:$0xff]  ;;  %v134_v22 = vld [vmem:[%s482_s11 + $0x88] sm:$0xff]  ;;  %v159_v23 = vmax.f32 %v129_v14, %v131_v16  ;;  %v165_v24 = vmax.f32 %v149_v6, %v157_v13  ;;  %v512_v42 = vmax.f32 %v150_v17, %v158_v19 }
  0x14   : > { %v135_v25 = vld [vmem:[%s482_s11 + $0x90] sm:$0xff]  ;;  %v136_v26 = vld [vmem:[%s482_s11 + $0x98] sm:$0xff]  ;;  %v137_v27 = vld [vmem:[%s482_s11 + $0xa0] sm:$0xff]  ;;  %v160_v29 = vmax.f32 %v130_v15, %v132_v20 }
  0x15   : > { %v138_v30 = vld [vmem:[%s482_s11 + $0xa8] sm:$0xff]  ;;  %v139_v31 = vld [vmem:[%s482_s11 + $0xb0] sm:$0xff]  ;;  %v140_v32 = vld [vmem:[%s482_s11 + $0xb8] sm:$0xff]  ;;  %v153_v33 = vmax.f32 %v133_v21, %v135_v25  ;;  %v154_v34 = vmax.f32 %v134_v22, %v136_v26  ;;  %v167_v35 = vmax.f32 %v151_v18, %v159_v23  ;;  %v174_v36 = vsel %vm173_vm0, %v165_v24, -inf }
  0x16   : > { %v141_v37 = vld [vmem:[%s482_s11 + $0xc0] sm:$0xff]  ;;  %v142_v38 = vld [vmem:[%s482_s11 + $0xc8] sm:$0xff]  ;;  %v143_v39 = vld [vmem:[%s482_s11 + $0xd0] sm:$0xff]  ;;  %v161_v40 = vmax.f32 %v137_v27, %v139_v31  ;;  %v162_v41 = vmax.f32 %v138_v30, %v140_v32  ;;  %v175_v43 = vrot.slane %v174_v36, 4  ;;  %v203_v48 = vsel %vm202_vm1, %v165_v24, -inf }
  0x17   : > { %v144_v44 = vld [vmem:[%s482_s11 + $0xd8] sm:$0xff]  ;;  %v145_v45 = vld [vmem:[%s482_s11 + $0xe0] sm:$0xff]  ;;  %v155_v46 = vmax.f32 %v141_v37, %v143_v39  ;;  %v181_v47 = vsel %vm173_vm0, %v167_v35, -inf  ;;  %v210_v49 = vsel %vm202_vm1, %v167_v35, -inf  ;;  %v146_v50 = vld [vmem:[%s482_s11 + $0xe8] sm:$0xff]  ;;  %v522_v54 = vmax.f32 %v152_v28, %v160_v29 }
  0x18   : > { %v147_v51 = vld [vmem:[%s482_s11 + $0xf0] sm:$0xff]  ;;  %v148_v52 = vld [vmem:[%s482_s11 + $0xf8] sm:$0xff]  ;;  %v156_v53 = vmax.f32 %v142_v38, %v144_v44  ;;  %v169_v55 = vmax.f32 %v153_v33, %v161_v40  ;;  %v176_v56 = vmax.f32 %v174_v36, %v175_v43  ;;  %v524_v58 = vmax.f32 %v154_v34, %v162_v41 }
  0x19   : > { %v163_v57 = vmax.f32 %v145_v45, %v147_v51  ;;  %v182_v59 = vrot.slane %v181_v47, 4  ;;  %v204_v60 = vrot.slane %v203_v48, 4  ;;  %v211_v63 = vrot.slane %v210_v49, 4 }
  0x1a   : > { %v177_v61 = vrot.slane %v176_v56, 2  ;;  %v188_v62 = vsel %vm173_vm0, %v169_v55, -inf  ;;  %v217_v0 = vsel %vm202_vm1, %v169_v55, -inf  ;;  %v164_v1 = vmax.f32 %v146_v50, %v148_v52 }
  0x1b   : > { %v171_v2 = vmax.f32 %v155_v46, %v163_v57  ;;  %v183_v3 = vmax.f32 %v181_v47, %v182_v59  ;;  %v189_v4 = vrot.slane %v188_v62, 4  ;;  %v205_v6 = vmax.f32 %v203_v48, %v204_v60 }
  0x1c   : > { %v178_v5 = vmax.f32 %v176_v56, %v177_v61  ;;  %v212_v7 = vmax.f32 %v210_v49, %v211_v63  ;;  %v218_v8 = vrot.slane %v217_v0, 4  ;;  %v172_v21 = vmax.f32 %v156_v53, %v164_v1 }
  0x1d   : > { %v184_v9 = vrot.slane %v183_v3, 2  ;;  %v190_v10 = vmax.f32 %v188_v62, %v189_v4  ;;  %v195_v11 = vsel %vm173_vm0, %v171_v2, -inf  ;;  %v224_v12 = vsel %vm202_vm1, %v171_v2, -inf }
  0x1e   : > { %v179_v13 = vrot.slane %v178_v5, 1  ;;  %v196_v14 = vrot.slane %v195_v11, 4  ;;  %v206_v15 = vrot.slane %v205_v6, 2  ;;  %v213_v16 = vrot.slane %v212_v7, 2 }
  0x1f   : > { %v185_v17 = vmax.f32 %v183_v3, %v184_v9  ;;  %v191_v18 = vrot.slane %v190_v10, 2  ;;  %v219_v19 = vmax.f32 %v217_v0, %v218_v8  ;;  %v225_v20 = vrot.slane %v224_v12, 4 }
  0x20   : > { %v197_v22 = vmax.f32 %v195_v11, %v196_v14  ;;  %v207_v23 = vmax.f32 %v205_v6, %v206_v15  ;;  %v214_v24 = vmax.f32 %v212_v7, %v213_v16  ;;  %v231_v32 = vsel %vm173_vm0, %v512_v42, -inf }
  0x21   : > { %v186_v25 = vrot.slane %v185_v17, 1  ;;  %v192_v26 = vmax.f32 %v190_v10, %v191_v18  ;;  %v220_v27 = vrot.slane %v219_v19, 2  ;;  %v226_v28 = vmax.f32 %v224_v12, %v225_v20 }
  0x22   : > { %v198_v29 = vrot.slane %v197_v22, 2  ;;  %v208_v30 = vrot.slane %v207_v23, 1  ;;  %v215_v31 = vrot.slane %v214_v24, 1  ;;  %v532_v33 = vmax.f32 %v178_v5, %v179_v13 }
  0x23   : > { %v193_v34 = vrot.slane %v192_v26, 1  ;;  %v221_v35 = vmax.f32 %v219_v19, %v220_v27  ;;  %v227_v36 = vrot.slane %v226_v28, 2  ;;  %v534_v37 = vmax.f32 %v185_v17, %v186_v25 }
  0x24   : > { %v199_v38 = vmax.f32 %v197_v22, %v198_v29  ;;  %v536_v39 = vmax.f32 %v207_v23, %v208_v30  ;;  %v232_v40 = vrot.slane %v231_v32, 4  ;;  %v538_v41 = vmax.f32 %v214_v24, %v215_v31 }
  0x25   : > { %v222_v43 = vrot.slane %v221_v35, 1  ;;  %v228_v44 = vmax.f32 %v226_v28, %v227_v36  ;;  %v238_v45 = vsel %vm173_vm0, %v522_v54, -inf  ;;  %v245_v49 = vsel %vm173_vm0, %v524_v58, -inf }
  0x26   : > { %v200_v46 = vrot.slane %v199_v38, 1  ;;  %v233_v47 = vmax.f32 %v231_v32, %v232_v40  ;;  %v239_v48 = vrot.slane %v238_v45, 4  ;;  %v544_v50 = vmax.f32 %v192_v26, %v193_v34 }
  0x27   : > { %v546_v51 = vmax.f32 %v221_v35, %v222_v43  ;;  %v246_v52 = vrot.slane %v245_v49, 4  ;;  %v252_v53 = vsel %vm173_vm0, %v172_v21, -inf  ;;  %v229_v55 = vrot.slane %v228_v44, 1 }
  0x28   : > { %v234_v56 = vrot.slane %v233_v47, 2  ;;  %v240_v57 = vmax.f32 %v238_v45, %v239_v48  ;;  %v253_v59 = vrot.slane %v252_v53, 4  ;;  %v549_v60 = vmax.f32 %v199_v38, %v200_v46 }
  0x29   : > { %v247_v61 = vmax.f32 %v245_v49, %v246_v52  ;;  %v259_v62 = vsel %vm202_vm1, %v512_v42, -inf  ;;  %v266_v63 = vsel %vm202_vm1, %v522_v54, -inf  ;;  %v273_v6 = vsel %vm202_vm1, %v524_v58, -inf }
  0x2a   : > { %v235_v0 = vmax.f32 %v233_v47, %v234_v56  ;;  %v241_v1 = vrot.slane %v240_v57, 2  ;;  %v254_v2 = vmax.f32 %v252_v53, %v253_v59  ;;  %v260_v3 = vrot.slane %v259_v62, 4 }
  0x2b   : > { %v248_v4 = vrot.slane %v247_v61, 2  ;;  %v267_v5 = vrot.slane %v266_v63, 4  ;;  %v280_v7 = vsel %vm202_vm1, %v172_v21, -inf  ;;  %v274_v54 = vrot.slane %v273_v6, 4 }
  0x2c   : > { %v236_v8 = vrot.slane %v235_v0, 1  ;;  %v242_v9 = vmax.f32 %v240_v57, %v241_v1  ;;  %v255_v10 = vrot.slane %v254_v2, 2  ;;  %v261_v42 = vmax.f32 %v259_v62, %v260_v3 }
  0x2d   : > { %v249_v11 = vmax.f32 %v247_v61, %v248_v4  ;;  %v268_v12 = vmax.f32 %v266_v63, %v267_v5  ;;  %v281_v13 = vrot.slane %v280_v7, 4  ;;  %v230_v14 = vmax.f32 %v228_v44, %v229_v55 }
  0x2e   : > { %v243_v15 = vrot.slane %v242_v9, 1  ;;  %v256_v16 = vmax.f32 %v254_v2, %v255_v10  ;;  %v262_v17 = vrot.slane %v261_v42, 2  ;;  %v275_v58 = vmax.f32 %v273_v6, %v274_v54 }
  0x2f   : > { %v250_v18 = vrot.slane %v249_v11, 1  ;;  %v269_v19 = vrot.slane %v268_v12, 2  ;;  %v282_v20 = vmax.f32 %v280_v7, %v281_v13  ;;  %v237_v21 = vmax.f32 %v235_v0, %v236_v8 }
  0x30   : > { %v257_v22 = vrot.slane %v256_v16, 1  ;;  %v263_v23 = vmax.f32 %v261_v42, %v262_v17  ;;  %v287_v24 = vmax.f32 %v532_v33, %v536_v39  ;;  %v244_v25 = vmax.f32 %v242_v9, %v243_v15 }
  0x31   : > { %v270_v26 = vmax.f32 %v268_v12, %v269_v19  ;;  %v276_v27 = vrot.slane %v275_v58, 2  ;;  %v283_v28 = vrot.slane %v282_v20, 2  ;;  %v251_v29 = vmax.f32 %v249_v11, %v250_v18 }
  0x32   : > { %v264_v30 = vrot.slane %v263_v23, 1  ;;  %v288_v31 = vmax.f32 %v534_v37, %v538_v41  ;;  %v289_v32 = vmax.f32 %v544_v50, %v546_v51  ;;  %v290_v38 = vmax.f32 %v549_v60, %v230_v14 }
  0x33   : > { %v271_v34 = vrot.slane %v270_v26, 1  ;;  %v277_v35 = vmax.f32 %v275_v58, %v276_v27  ;;  %v284_v36 = vmax.f32 %v282_v20, %v283_v28  ;;  %v258_v40 = vmax.f32 %v256_v16, %v257_v22 }
  0x34   : > { %v265_v43 = vmax.f32 %v263_v23, %v264_v30  ;;  %v292_v44 = vsel %vm291_vm2, %v287_v24, -inf  ;;  %v293_v45 = vsel %vm291_vm2, %v288_v31, -inf  ;;  %v295_v49 = vsel %vm291_vm2, %v289_v32, -inf }
  0x35   : > { %v272_v46 = vmax.f32 %v270_v26, %v271_v34  ;;  %v278_v47 = vrot.slane %v277_v35, 1  ;;  %v285_v48 = vrot.slane %v284_v36, 1  ;;  %v296_v52 = vsel %vm291_vm2, %v290_v38, -inf }
  0x36   : > { %v300_v53 = vmax.f32 %v237_v21, %v265_v43  ;;  %v341_v55 = vsel %vm340_vm3, %v538_v41, %v536_v39  ;;  %v294_v59 = vmax.f32 %v292_v44, %v293_v45  ;;  %v297_v62 = vmax.f32 %v295_v49, %v296_v52 }
  0x37   : > { %v279_v56 = vmax.f32 %v277_v35, %v278_v47  ;;  %v286_v57 = vmax.f32 %v284_v36, %v285_v48  ;;  %v301_v61 = vmax.f32 %v244_v25, %v272_v46  ;;  %v343_v0 = vsel %vm342_vm5, %v546_v51, %v341_v55 }
  0x38   : > { %v304_v63 = vsel %vm291_vm2, %v300_v53, -inf  ;;  %v351_v1 = vsel %vm330_vm4, %v244_v25, %v237_v21  ;;  %v345_v41 = vsel %vm344_vm8, %v230_v14, %v343_v0  ;;  %v359_v7 = vsel %vm340_vm3, %v272_v46, %v265_v43 }
  0x39   : > { %v302_v2 = vmax.f32 %v251_v29, %v279_v56  ;;  %v303_v3 = vmax.f32 %v258_v40, %v286_v57  ;;  %v305_v4 = vsel %vm291_vm2, %v301_v61, -inf  ;;  %v352_v5 = vsel %vm332_vm6, %v251_v29, %v351_v1 }
  0x3a   : > { %v306_v39 = vmax.f32 %v304_v63, %v305_v4  ;;  %v368_v8 = vsel %vm298_vm7, %v549_v60, %v345_v41  ;;  %v299_v9 = vsel %vm298_vm7, %v294_v59, %v297_v62  ;;  %v360_v42 = vsel %vm342_vm5, %v279_v56, %v359_v7 }
  0x3b   : > { %v307_v51 = vsel %vm291_vm2, %v302_v2, -inf  ;;  %v308_v6 = vsel %vm291_vm2, %v303_v3, -inf  ;;  %v369_v11 = vsel %vm366_vm9, %v368_v8, %v352_v5  ;;  %v361_v12 = vsel %vm344_vm8, %v286_v57, %v360_v42 }
  0x3c   : > { %v309_v10 = vmax.f32 %v307_v51, %v308_v6  ;;  %372 = vst.msk [vmem:[%s581_s15 + $0x8] sm:$0xff] %vm291_vm2, %v369_v11  ;;  %v370_v13 = vsel %vm298_vm7, %v258_v40, %v361_v12  ;;  %v321_v58 = vrot.slane %v299_v9, 7  ;;  %v331_v20 = vsel %vm330_vm4, %v534_v37, %v532_v33 }
  0x3d   : > { %374 = vst.msk [vmem:[%s581_s15 + $0x10] sm:$0x1f] %vm373_vm10, %v370_v13  ;;  %v333_v23 = vsel %vm332_vm6, %v544_v50, %v331_v20 }
  0x3e   : > { %v310_v54 = vsel %vm298_vm7, %v306_v39, %v309_v10 }
  0x3f   : > { %v311_v14 = vmax.f32 %v299_v9, %v310_v54  ;;  %v324_v21 = vrot.slane %v310_v54, 5 }
  0x41   : > { %v313_v60 = vsel %vm312_vm11, %v311_v14, -inf }
  0x42   : > { %v314_v15 = vrot.slane %v313_v60, 4 }
  0x44   : > { %v315_v16 = vmax.f32 %v313_v60, %v314_v15 }
  0x46   : > { %v316_v17 = vrot.slane %v315_v16, 2 }
  0x48   : > { %v317_v18 = vmax.f32 %v315_v16, %v316_v17 }
  0x4a   : > { %v318_v19 = vrot.slane %v317_v18, 1 }
  0x4c   : > { %v319_v22 = vmax.f32 %v317_v18, %v318_v19 }
  0x4e   : > { %v363_v24 = vsel %vm298_vm7, %v319_v22, %v321_v58 }
  0x4f   : > { %v365_v25 = vsel %vm364_vm12, %v363_v24, %v324_v21 }
  0x50   : > { %v367_v26 = vsel %vm366_vm9, %v365_v25, %v333_v23 }
  0x51   : > { %371 = vst.msk [vmem:[%s581_s15] sm:$0xff] %vm291_vm2, %v367_v26 }
  0x52 PF: > { %s11_s6 = sadd.s32 1, %s456_s6  }
  0x53   : > { %p8_p4 = scmp.ge.s32.totalorder %s11_s6, 4  }
  0x55   :  { %10 = sbr.rel (!%p8_p4) target bundleno = 1 (0x1), region = 54 }

</bundles_post_ra>
